<compile_context>
chip_gen: v7x
topology: tpu7x:2x2x1
jax: 0.10.0
libtpu: 0.0.40
codegen_flags: <defaults>
</compile_context>

<pallas_src>
import numpy as np
import jax
import jax.numpy as jnp
from jax import lax
from jax.experimental import pallas as pl
from jax.experimental.pallas import tpu as pltpu


# --------------------------------------------------------------------------------------
# Small helpers
# --------------------------------------------------------------------------------------
def _round_up(x, m):
    return ((x + m - 1) // m) * m


def _largest_divisor_tile(n, cap, step, min_blocks=1):
    """Largest multiple of `step` that divides n, is <= cap, and yields >= min_blocks
    blocks (falls back to the largest divisor <= cap if min_blocks is unreachable)."""
    cap = max(step, min(cap, n))
    cap = (cap // step) * step
    fallback = None
    t = cap
    while t >= step:
        if n % t == 0:
            if fallback is None:
                fallback = t
            if n // t >= min_blocks:
                return t
        t -= step
    return fallback if fallback is not None else n


def _vmem_limit_bytes():
    """Per-generation VMEM budget with headroom (v7x has 64 MiB physical)."""
    try:
        cap = pltpu.get_tpu_info().vmem_capacity_bytes
    except Exception:
        return 40 * 1024 * 1024
    if cap <= 64 * 1024 * 1024:
        return 40 * 1024 * 1024          # v7x
    return 96 * 1024 * 1024              # v5e / v6e (128 MiB physical)


def _apply_activation(x, name):
    if name is None:
        return x
    if name == "relu":
        return jnp.maximum(x, 0.0)
    if name == "gelu":
        return jax.nn.gelu(x, approximate=True)
    if name == "elu":
        return jnp.where(x > 0, x, jnp.expm1(x))
    # TODO(synk): 'prelu' has a learned slope parameter; not plumbed through.
    raise NotImplementedError(f"activation {name!r} not supported in the Pallas kernel")


# --------------------------------------------------------------------------------------
# Kernel 1: per-layer feature projection  xw = (x * onorm) @ W   (+ optional linear res)
# --------------------------------------------------------------------------------------
def _make_project_kernel(with_linear_res):
    if with_linear_res:
        def kernel(x_ref, onorm_ref, w_ref, wres_ref, xw_ref, res_ref):
            xs = x_ref[...] * onorm_ref[...]                       # (T, Din) * (T, 1)
            xw_ref[...] = jnp.dot(xs, w_ref[...],
                                  preferred_element_type=jnp.float32).astype(xw_ref.dtype)
            res_ref[...] = jnp.dot(x_ref[...], wres_ref[...],
                                   preferred_element_type=jnp.float32).astype(res_ref.dtype)
    else:
        def kernel(x_ref, onorm_ref, w_ref, xw_ref):
            xs = x_ref[...] * onorm_ref[...]
            xw_ref[...] = jnp.dot(xs, w_ref[...],
                                  preferred_element_type=jnp.float32).astype(xw_ref.dtype)
    return kernel


# --------------------------------------------------------------------------------------
# Kernel 2: aggregation + fused epilogue
#   acc[i] += A[i, k] @ xw[k]        (k-tiled, f32 accumulator)
#   at last k:  out = act(LN((acc + b) * inorm + res))
# --------------------------------------------------------------------------------------
def _make_aggregate_kernel(has_res, use_norm, activation, eps=1e-5):
    def kernel(*refs):
        it = iter(refs)
        a_ref = next(it)                                  # (TN, TK) bf16 adjacency tile
        xw_ref = next(it)                                 # (TK, Dout) f32 projected feats
        b_ref = next(it)                                  # (1, Dout)
        inorm_ref = next(it)                              # (TN, 1)
        res_ref = next(it) if has_res else None           # (TN, Dout)
        gamma_ref = next(it) if use_norm else None        # (1, Dout)
        beta_ref = next(it) if use_norm else None         # (1, Dout)
        o_ref = next(it)                                  # (TN, Dout) output
        acc_ref = next(it)                                # (TN, Dout) f32 scratch

        k = pl.program_id(1)

        @pl.when(k == 0)
        def _():
            acc_ref[...] = jnp.zeros_like(acc_ref)

        # bf16 adjacency streamed from HBM (0/1 exact); promoted in-register for the dot.
        acc_ref[...] += jnp.dot(a_ref[...], xw_ref[...],
                                preferred_element_type=jnp.float32)

        @pl.when(k == pl.num_programs(1) - 1)
        def _():
            # Spec module order: (agg @ W + b) * inorm  (bias BEFORE in-degree scaling).
            rst = (acc_ref[...] + b_ref[...]) * inorm_ref[...]
            if has_res:
                rst = rst + res_ref[...].astype(jnp.float32)
            if use_norm:
                mu = jnp.mean(rst, axis=-1, keepdims=True)
                d = rst - mu
                var = jnp.mean(d * d, axis=-1, keepdims=True)
                rst = gamma_ref[...] * (d * lax.rsqrt(var + eps)) + beta_ref[...]
            rst = _apply_activation(rst, activation)
            o_ref[...] = rst.astype(o_ref.dtype)

    return kernel


# --------------------------------------------------------------------------------------
# One GraphConv layer (operates on pre-padded arrays)
# --------------------------------------------------------------------------------------
def graphconv_pallas(adj_pad, onorm_pad, inorm_pad, x_pad, fc_wT, fc_b, *,
                     res_wT=None, residual=True, gamma=None, beta=None,
                     activation="relu", tile_n=256, tile_k=512, vmem_limit=40 * 1024 * 1024):
    n_pad = adj_pad.shape[0]
    d_in = x_pad.shape[1]
    d_out = fc_wT.shape[1]
    use_norm = gamma is not None

    if not residual:
        res_mode = "none"
    elif res_wT is not None:
        res_mode = "linear"
    elif d_in == d_out:
        res_mode = "identity"
    else:
        raise ValueError("residual with mismatched dims needs res_w")

    cparams = pltpu.CompilerParams(dimension_semantics=("parallel",),
                                   vmem_limit_bytes=vmem_limit)

    # ---- projection: xw = (x * onorm) @ W  (and linear residual if needed) ----
    proj_in_specs = [
        pl.BlockSpec((tile_n, d_in), lambda i: (i, 0)),
        pl.BlockSpec((tile_n, 1), lambda i: (i, 0)),
        pl.BlockSpec((d_in, d_out), lambda i: (0, 0)),
    ]
    if res_mode == "linear":
        out = pl.pallas_call(
            _make_project_kernel(True),
            out_shape=(jax.ShapeDtypeStruct((n_pad, d_out), jnp.float32),
                       jax.ShapeDtypeStruct((n_pad, d_out), jnp.float32)),
            grid=(n_pad // tile_n,),
            in_specs=proj_in_specs + [pl.BlockSpec((d_in, d_out), lambda i: (0, 0))],
            out_specs=(pl.BlockSpec((tile_n, d_out), lambda i: (i, 0)),
                       pl.BlockSpec((tile_n, d_out), lambda i: (i, 0))),
            compiler_params=cparams,
        )(x_pad, onorm_pad, fc_wT, res_wT)
        xw, res = out
    else:
        xw = pl.pallas_call(
            _make_project_kernel(False),
            out_shape=jax.ShapeDtypeStruct((n_pad, d_out), jnp.float32),
            grid=(n_pad // tile_n,),
            in_specs=proj_in_specs,
            out_specs=pl.BlockSpec((tile_n, d_out), lambda i: (i, 0)),
            compiler_params=cparams,
        )(x_pad, onorm_pad, fc_wT)
        res = x_pad if res_mode == "identity" else None

    # ---- aggregation + fused epilogue, k-tiled over the source dimension ----
    args = [adj_pad, xw, fc_b.reshape(1, d_out), inorm_pad]
    specs = [
        pl.BlockSpec((tile_n, tile_k), lambda i, k: (i, k)),
        pl.BlockSpec((tile_k, d_out), lambda i, k: (k, 0)),
        pl.BlockSpec((1, d_out), lambda i, k: (0, 0)),
        pl.BlockSpec((tile_n, 1), lambda i, k: (i, 0)),
    ]
    if res_mode != "none":
        args.append(res)
        specs.append(pl.BlockSpec((tile_n, d_out), lambda i, k: (i, 0)))
    if use_norm:
        args += [gamma.reshape(1, d_out), beta.reshape(1, d_out)]
        specs += [pl.BlockSpec((1, d_out), lambda i, k: (0, 0)),
                  pl.BlockSpec((1, d_out), lambda i, k: (0, 0))]

    return pl.pallas_call(
        _make_aggregate_kernel(res_mode != "none", use_norm, activation),
        out_shape=jax.ShapeDtypeStruct((n_pad, d_out), x_pad.dtype),
        grid=(n_pad // tile_n, n_pad // tile_k),
        in_specs=specs,
        out_specs=pl.BlockSpec((tile_n, d_out), lambda i, k: (i, 0)),
        scratch_shapes=[pltpu.VMEM((tile_n, d_out), jnp.float32)],
        compiler_params=pltpu.CompilerParams(
            dimension_semantics=("parallel", "arbitrary"),
            vmem_limit_bytes=vmem_limit,
        ),
    )(*args)


# --------------------------------------------------------------------------------------
# GCN forward (stack of GraphConv layers, head = Identity)
# --------------------------------------------------------------------------------------
def gcn_forward_pallas(adj, x, layer_params, *, tile_rows=256, tile_cols=512,
                       return_hidden=False):
    N = adj.shape[0]

    # Degrees / norms computed ONCE for the whole stack (A is the same every layer).
    deg_out = jnp.maximum(jnp.sum(adj, axis=0), 1.0)
    deg_in = jnp.maximum(jnp.sum(adj, axis=1), 1.0)
    onorm = lax.rsqrt(deg_out).astype(jnp.float32)
    inorm = lax.rsqrt(deg_in).astype(jnp.float32)

    # Pad node count so (8,128)-aligned tiles always exist.  Padded rows/cols of A are
    # zero, padded norms are 1; padded output rows are sliced off below.
    n_pad = _round_up(N, 128)
    pad = n_pad - N
    tile_k = _largest_divisor_tile(n_pad, tile_cols, 128, min_blocks=1)
    tile_n = _largest_divisor_tile(n_pad, tile_rows, 8,
                                   min_blocks=4 if n_pad >= 32 else 1)

    adj_pad = jnp.pad(adj.astype(jnp.bfloat16), ((0, pad), (0, pad)))   # bf16 A (exact 0/1)
    onorm_pad = jnp.pad(onorm, (0, pad), constant_values=1.0).reshape(n_pad, 1)
    inorm_pad = jnp.pad(inorm, (0, pad), constant_values=1.0).reshape(n_pad, 1)
    h = jnp.pad(x.astype(jnp.float32), ((0, pad), (0, 0)))

    vmem_limit = _vmem_limit_bytes()

    # Pre-transpose weights once, before the layer loop (PyTorch stores (out,in)).
    # In production these would be stored as (Din, Dout) and this loop would disappear.
    prepped = []
    for p in layer_params:
        prepped.append(dict(
            fc_wT=jnp.asarray(p["fc_w"]).T,
            fc_b=jnp.asarray(p["fc_b"]),
            res_wT=None if p.get("res_w") is None else jnp.asarray(p["res_w"]).T,
            residual=p["residual"],
            gamma=p.get("gamma"), beta=p.get("beta"),
            activation=p["activation"],
        ))

    hidden_list = []
    for p in prepped:
        h = graphconv_pallas(adj_pad, onorm_pad, inorm_pad, h,
                             p["fc_wT"], p["fc_b"],
                             res_wT=p["res_wT"], residual=p["residual"],
                             gamma=p["gamma"], beta=p["beta"],
                             activation=p["activation"],
                             tile_n=tile_n, tile_k=tile_k, vmem_limit=vmem_limit)
        hidden_list.append(h[:N])

    out = h[:N]
    if return_hidden:
        return out, hidden_list
    return out


# --------------------------------------------------------------------------------------
# Pure-JAX reference (correctness check only)
# --------------------------------------------------------------------------------------
def graphconv_ref(adj, x, fc_w, fc_b, res_w, residual, gamma, beta, activation):
    deg_out = jnp.maximum(jnp.sum(adj, axis=0), 1.0)
    deg_in = jnp.maximum(jnp.sum(adj, axis=1), 1.0)
    onorm = deg_out ** -0.5
    inorm = deg_in ** -0.5
    agg = adj @ (x * onorm[:, None])
    rst = agg @ fc_w.T + fc_b
    rst = rst * inorm[:, None]
    if residual:
        res = x if res_w is None else x @ res_w.T
        rst = rst + res
    if gamma is not None:
        mu = jnp.mean(rst, -1, keepdims=True)
        var = jnp.mean((rst - mu) ** 2, -1, keepdims=True)
        rst = gamma * (rst - mu) / jnp.sqrt(var + 1e-5) + beta
    if activation == "relu":
        rst = jnp.maximum(rst, 0.0)
    return rst


def gcn_forward_ref(adj, x, layer_params):
    h = x
    for p in layer_params:
        h = graphconv_ref(adj, h, p["fc_w"], p["fc_b"], p.get("res_w"),
                          p["residual"], p.get("gamma"), p.get("beta"),
                          p["activation"])
    return h


# --------------------------------------------------------------------------------------
if __name__ == "__main__":
    # Small GCN: in_dim=48 -> hidden=32 -> out=32, 2 layers, relu, residual, LayerNorm.
    # N=200 is deliberately not a multiple of 128/8 to exercise the padding path; with
    # tile_rows=32 / tile_cols=128 we get an 8 x 2 (row x k) grid per layer.
    N = 200
    in_dim, num_hidden, out_dim = 48, 32, 32

    key = jax.random.PRNGKey(0)
    ka, kx, kw0, kb0, kr0, kw1, kb1 = jax.random.split(key, 7)

    # Deterministic undirected graph with self loops (degrees >= 1).
    r = jax.random.uniform(ka, (N, N))
    adj = (r < 0.05).astype(jnp.float32)
    adj = jnp.maximum(adj, adj.T)
    adj = jnp.maximum(adj, jnp.eye(N, dtype=jnp.float32))

    x = jax.random.normal(kx, (N, in_dim), dtype=jnp.float32)

    layer_params = [
        {   # layer 0: 48 -> 32, linear residual (dims differ), layernorm, relu
            "fc_w": 0.1 * jax.random.normal(kw0, (num_hidden, in_dim), jnp.float32),
            "fc_b": 0.1 * jax.random.normal(kb0, (num_hidden,), jnp.float32),
            "res_w": 0.1 * jax.random.normal(kr0, (num_hidden, in_dim), jnp.float32),
            "residual": True,
            "gamma": jnp.ones((num_hidden,), jnp.float32),
            "beta": jnp.zeros((num_hidden,), jnp.float32),
            "activation": "relu",
        },
        {   # layer 1: 32 -> 32, identity residual, layernorm, relu
            "fc_w": 0.1 * jax.random.normal(kw1, (out_dim, num_hidden), jnp.float32),
            "fc_b": 0.1 * jax.random.normal(kb1, (out_dim,), jnp.float32),
            "res_w": None,
            "residual": True,
            "gamma": jnp.ones((out_dim,), jnp.float32),
            "beta": jnp.zeros((out_dim,), jnp.float32),
            "activation": "relu",
        },
    ]

    out = gcn_forward_pallas(adj, x, layer_params, tile_rows=32, tile_cols=128)
    jax.block_until_ready(out)

    ref = gcn_forward_ref(adj, x, layer_params)
    np.testing.assert_allclose(np.asarray(out), np.asarray(ref), rtol=1e-4, atol=1e-4)

    print("KERNEL_OK")
</pallas_src>

<mosaic_0001>
module attributes {stable_mosaic.version = 11 : i64} {
  func.func @kernel(%arg0: i32, %arg1: memref<32x48xf32, #tpu.memory_space<vmem>>, %arg2: memref<32x1xf32, #tpu.memory_space<vmem>>, %arg3: memref<48x32xf32, #tpu.memory_space<vmem>>, %arg4: memref<48x32xf32, #tpu.memory_space<vmem>>, %arg5: memref<32x32xf32, #tpu.memory_space<vmem>>, %arg6: memref<32x32xf32, #tpu.memory_space<vmem>>) attributes {dimension_semantics = [#tpu.dimension_semantics<parallel>], iteration_bounds = array<i64: 8>, scalar_prefetch = 0 : i64, scratch_operands = 0 : i64, tpu.core_type = #tpu.core_type<tc>, window_params = [{transform_indices = @transform_0, window_bounds = array<i64: 32, 48>}, {transform_indices = @transform_1, window_bounds = array<i64: 32, 1>}, {pipeline_mode = #tpu.pipeline_mode<synchronous>, transform_indices = @transform_2, window_bounds = array<i64: 48, 32>}, {pipeline_mode = #tpu.pipeline_mode<synchronous>, transform_indices = @transform_3, window_bounds = array<i64: 48, 32>}, {transform_indices = @transform_4, window_bounds = array<i64: 32, 32>}, {transform_indices = @transform_5, window_bounds = array<i64: 32, 32>}]} {
    %c0 = arith.constant 0 : index
    %c0_0 = arith.constant 0 : index
    %0 = vector.load %arg1[%c0, %c0_0] : memref<32x48xf32, #tpu.memory_space<vmem>>, vector<32x48xf32>
    %c0_1 = arith.constant 0 : index
    %c0_2 = arith.constant 0 : index
    %1 = vector.load %arg2[%c0_1, %c0_2] : memref<32x1xf32, #tpu.memory_space<vmem>>, vector<32x1xf32>
    %2 = vector.broadcast %1 : vector<32x1xf32> to vector<32x48xf32>
    %3 = arith.mulf %0, %2 : vector<32x48xf32>
    %c0_3 = arith.constant 0 : index
    %c0_4 = arith.constant 0 : index
    %4 = vector.load %arg3[%c0_3, %c0_4] : memref<48x32xf32, #tpu.memory_space<vmem>>, vector<48x32xf32>
    %cst = arith.constant dense<0.000000e+00> : vector<32x32xf32>
    %5 = tpu.matmul %3, %4, %cst {dimension_numbers = #tpu.dot_dimension_numbers<[1], [0], [0], [1], [0, 0, 1, 1], [], []>} : vector<32x48xf32>, vector<48x32xf32>, vector<32x32xf32> -> vector<32x32xf32>
    %c0_5 = arith.constant 0 : index
    %c0_6 = arith.constant 0 : index
    %6 = vector.load %arg5[%c0_5, %c0_6] : memref<32x32xf32, #tpu.memory_space<vmem>>, vector<32x32xf32>
    tpu.vector_store %arg5[%c0_5, %c0_6], %5 {strides = array<i32>} : memref<32x32xf32, #tpu.memory_space<vmem>>, vector<32x32xf32>,
    %c0_7 = arith.constant 0 : index
    %c0_8 = arith.constant 0 : index
    %7 = vector.load %arg1[%c0_7, %c0_8] : memref<32x48xf32, #tpu.memory_space<vmem>>, vector<32x48xf32>
    %c0_9 = arith.constant 0 : index
    %c0_10 = arith.constant 0 : index
    %8 = vector.load %arg4[%c0_9, %c0_10] : memref<48x32xf32, #tpu.memory_space<vmem>>, vector<48x32xf32>
    %cst_11 = arith.constant dense<0.000000e+00> : vector<32x32xf32>
    %9 = tpu.matmul %7, %8, %cst_11 {dimension_numbers = #tpu.dot_dimension_numbers<[1], [0], [0], [1], [0, 0, 1, 1], [], []>} : vector<32x48xf32>, vector<48x32xf32>, vector<32x32xf32> -> vector<32x32xf32>
    %c0_12 = arith.constant 0 : index
    %c0_13 = arith.constant 0 : index
    %10 = vector.load %arg6[%c0_12, %c0_13] : memref<32x32xf32, #tpu.memory_space<vmem>>, vector<32x32xf32>
    tpu.vector_store %arg6[%c0_12, %c0_13], %9 {strides = array<i32>} : memref<32x32xf32, #tpu.memory_space<vmem>>, vector<32x32xf32>,
    return
  }
  func.func @transform_0(%arg0: i32) -> (i32, i32) {
    %c0_i32 = arith.constant 0 : i32
    %c0_i32_0 = arith.constant 0 : i32
    return %arg0, %c0_i32 : i32, i32
  }
  func.func @transform_1(%arg0: i32) -> (i32, i32) {
    %c0_i32 = arith.constant 0 : i32
    %c0_i32_0 = arith.constant 0 : i32
    return %arg0, %c0_i32 : i32, i32
  }
  func.func @transform_2(%arg0: i32) -> (i32, i32) {
    %c0_i32 = arith.constant 0 : i32
    %c0_i32_0 = arith.constant 0 : i32
    %c0_i32_1 = arith.constant 0 : i32
    return %c0_i32, %c0_i32_0 : i32, i32
  }
  func.func @transform_3(%arg0: i32) -> (i32, i32) {
    %c0_i32 = arith.constant 0 : i32
    %c0_i32_0 = arith.constant 0 : i32
    %c0_i32_1 = arith.constant 0 : i32
    return %c0_i32, %c0_i32_0 : i32, i32
  }
  func.func @transform_4(%arg0: i32) -> (i32, i32) {
    %c0_i32 = arith.constant 0 : i32
    %c0_i32_0 = arith.constant 0 : i32
    return %arg0, %c0_i32 : i32, i32
  }
  func.func @transform_5(%arg0: i32) -> (i32, i32) {
    %c0_i32 = arith.constant 0 : i32
    %c0_i32_0 = arith.constant 0 : i32
    return %arg0, %c0_i32 : i32, i32
  }
}

</mosaic_0001>

<bundles_post_ra>
// kernel: tpu_custom_call.1
= control target key start
LH: loop header
LB: loop body
LE: loop exit
PB: predicated region body
PF: predicated region fallthrough
CT: control target
= control target key end

     0   :  { %s771_s18 = smov 0   ;;  %s852_s0 = inlined_call_operand.vmem [shape: f32[256,48], index: 0, kind: input, shape index: {}]   ;;  %s853_s1 = inlined_call_operand.vmem [shape: f32[256,1], index: 1, kind: input, shape index: {}]   ;;  %s854_s2 = inlined_call_operand.vmem [shape: f32[48,32], index: 2, kind: input, shape index: {}]   ;;  %s855_s3 = inlined_call_operand.vmem [shape: f32[48,32], index: 3, kind: input, shape index: {}]   ;;  %s856_s4 = inlined_call_operand.vmem [shape: f32[256,32], index: 4, kind: output, shape index: {0}]   ;;  %s857_s5 = inlined_call_operand.vmem [shape: f32[256,32], index: 5, kind: output, shape index: {1}]  }
   0x1 LB: > { %s618_s19 = sadd.s32 4294967295, %s738_s18   ;;  %p622_p0 = scmp.ge.s32.totalorder %s738_s18, 1  ;;  %s738_s18 = sphi %s771_s18, %s16_s18  }
   0x2   : > { %p202_p1 = scmp.lt.s32.totalorder %s738_s18, 9 }
   0x4   : > { %p203_p2 = pnand %p622_p0, %p202_p1 }
   0x5   : > { %s623_s20 = sshll.u32 (!%p203_p2), %s618_s19, 2  ;;  %v409_v0 = vld [vmem:[%s855_s3] sm:$0xff] (!%p203_p2)  ;;  %v410_v1 = vld [vmem:[%s855_s3 + $0x8] sm:$0xff] (!%p203_p2)  ;;  %v740_v3 = vmov (!%p203_p2), 0   ;;  %v411_v6 = vld [vmem:[%s855_s3 + $0x10] sm:$0xff] (!%p203_p2)  ;;  %vm302_vm0 = vcmask (!%p203_p2), 392192  }
   0x6   : > { %206 = sbr.rel (%p203_p2) target bundleno = 369 (0x171), region = 36  ;;  %v296_v2 = vld [vmem:[%s854_s2] sm:$0xff] (!%p203_p2)  ;;  %731 = vset.pattern.permute.xlu1 (!%p203_p2), %v740_v3  ;;  %730 = vset.pattern.permute.xlu0 (!%p203_p2), %v740_v3  ;;  %p241_p3 = scmp.lt.s32.totalorder (!%p203_p2), %s623_s20, 31  ;;  %v709_v4 = vpack.c.bf16 (!%p203_p2), %v410_v1, %v409_v0  ;;  %v297_v5 = vld [vmem:[%s854_s2 + $0x8] sm:$0xff] (!%p203_p2)  ;;  %v412_v7 = vld [vmem:[%s855_s3 + $0x18] sm:$0xff] (!%p203_p2)  ;;  %vm400_vm1 = vcmask (!%p203_p2), 261120  }
   0x7   : > { %v697_v8 = vpack.c.bf16 (!%p203_p2), %v297_v5, %v296_v2  ;;  %v713_v9 = vpack.c.bf16 (!%p203_p2), %v412_v7, %v411_v6  ;;  %v298_v10 = vld [vmem:[%s854_s2 + $0x10] sm:$0xff] (!%p203_p2)  ;;  %v299_v11 = vld [vmem:[%s854_s2 + $0x18] sm:$0xff] (!%p203_p2)  ;;  %v413_v13 = vld [vmem:[%s855_s3 + $0x20] sm:$0xff] (!%p203_p2) }
   0x8   : > { %710 = vmatprep.subr.bf16.mxu1 (!%p203_p2), %v709_v4  ;;  %v701_v12 = vpack.c.bf16 (!%p203_p2), %v299_v11, %v298_v10  ;;  %v414_v14 = vld [vmem:[%s855_s3 + $0x28] sm:$0xff] (!%p203_p2)  ;;  %v300_v21 = vld [vmem:[%s854_s2 + $0x20] sm:$0xff] (!%p203_p2) }
   0x9   : > { %698 = vmatprep.subr.bf16.mxu0 (!%p203_p2), %v697_v8  ;;  %712 = vmatpush3.bf16.msra.mxu1 (!%p203_p2), %v709_v4  ;;  %v717_v17 = vpack.c.bf16 (!%p203_p2), %v414_v14, %v413_v13  ;;  %v301_v22 = vld [vmem:[%s854_s2 + $0x28] sm:$0xff] (!%p203_p2) }
   0xa   : > { %700 = vmatpush3.bf16.msra.mxu0 (!%p203_p2), %v697_v8  ;;  %714 = vmatprep.subr.bf16.mxu1 (!%p203_p2), %v713_v9  ;;  %v705_v23 = vpack.c.bf16 (!%p203_p2), %v301_v22, %v300_v21 }
   0xb   : > { %702 = vmatprep.subr.bf16.mxu0 (!%p203_p2), %v701_v12 }
   0xd   : > { %s859_s20 = smov (!%p241_p3, %s623_s20), 31  ;;  %716 = vmatpush3.bf16.msra.mxu1 %v713_v9 }
   0xe   : > { %s803_s12 = sshll.u32 %s859_s20, 3  ;;  %704 = vmatpush3.bf16.msra.mxu0 %v701_v12  ;;  %718 = vmatprep.subr.bf16.mxu1 %v717_v17 }
   0xf   : > { %s250_s15 = scalar_lea.vmem %s853_s1, %s803_s12  ;;  %s244_s19 = scalar_lea.vmem %s852_s0, %s803_s12  ;;  %706 = vmatprep.subr.bf16.mxu0 %v705_v23 }
  0x10   : > { %v270_v15 = vld [vmem:[%s250_s15 + $0x10] sm:$0xff]  ;;  %v268_v16 = vld [vmem:[%s250_s15] sm:$0xff]  ;;  %v271_v18 = vld [vmem:[%s250_s15 + $0x18] sm:$0xff]  ;;  %s262_s30 = scalar_lea.vmem %s857_s5, %s803_s12  ;;  %s256_s8 = scalar_lea.vmem %s856_s4, %s803_s12 }
  0x11   : > { %284 = vperm.xlu1 %731, %v270_v15   ;;  %274 = vperm.xlu0 %730, %v268_v16   ;;  %v269_v19 = vld [vmem:[%s250_s15 + $0x8] sm:$0xff]  ;;  %v264_v20 = vld [vmem:[%s244_s19] sm:$0xff]  ;;  %v266_v25 = vld [vmem:[%s244_s19 + $0x10] sm:$0xff] }
  0x12   : > { %691 = vmatprep.mubr.msk.f32.mxu1 %vm302_vm0, %v264_v20  ;;  %720 = vmatpush3.bf16.msra.mxu1 %v717_v17  ;;  %v265_v24 = vld [vmem:[%s244_s19 + $0x8] sm:$0xff]  ;;  %v267_v26 = vld [vmem:[%s244_s19 + $0x18] sm:$0xff] }
  0x13   : > { %708 = vmatpush3.bf16.msra.mxu0 %v705_v23 }
  0x15   : > { %289 = vperm.xlu1 %731, %v271_v18   ;;  %279 = vperm.xlu0 %730, %v269_v19  }
  0x16   : > { %692 = vmatmul.mubr.msk.f32.vlgmr.msra.gmra.mrb[0].mxu1 %vm302_vm0, %v265_v24 }
  0x17   : > { %694 = vmatprep.mubr.msk.f32.mxu1 %vm302_vm0, %v266_v25 }
  0x1a   : > { %695 = vmatmul.mubr.msk.f32.gmra.mrb[2].mxu1 %vm302_vm0, %v267_v26 }
  0x90   : > { %v285_v27 = vpop.permute.xlu1 %284  ;;  %v275_v28 = vpop.permute.xlu0 %274 }
  0x91   : > { %v292_v29 = vmul.f32 %v275_v28, %v264_v20  ;;  %v294_v30 = vmul.f32 %v285_v27, %v266_v25 }
  0x93   : > { %673 = vmatprep.mubr.msk.f32.mxu0 %vm302_vm0, %v292_v29 }
  0x94   : > { %v280_v31 = vpop.permute.xlu0 %279  ;;  %v290_v33 = vpop.permute.xlu1 %289 }
  0x95   : > { %v293_v32 = vmul.f32 %v280_v31, %v265_v24  ;;  %v295_v34 = vmul.f32 %v290_v33, %v267_v26 }
  0x97   : > { %674 = vmatmul.mubr.msk.f32.vlgmr.msra.gmra.mrb[0].mxu0 %vm302_vm0, %v293_v32 }
  0x98   : > { %676 = vmatprep.mubr.msk.f32.mxu0 %vm302_vm0, %v294_v30 }
  0x9b   : > { %677 = vmatmul.mubr.msk.f32.gmra.mrb[2].mxu0 %vm302_vm0, %v295_v34 }
  0xe9   : > { %v693_v35 = vpop.f32.mrb[0].mxu1 }
  0xea   : > { %513 = vst.msk [vmem:[%s262_s30 + $0x8] sm:$0xff] %vm400_vm1, %v693_v35  ;;  %v493_v36 = vpop.f32.mrb[1].mxu1 }
  0xeb   : > { %512 = vst.msk [vmem:[%s262_s30] sm:$0xff] %vm400_vm1, %v493_v36 }
  0xed   : > { %v696_v37 = vpop.f32.mrb[2].mxu1 }
  0xee   : > { %515 = vst.msk [vmem:[%s262_s30 + $0x18] sm:$0xff] %vm400_vm1, %v696_v37  ;;  %v503_v38 = vpop.f32.mrb[3].mxu1 }
  0xef   : > { %514 = vst.msk [vmem:[%s262_s30 + $0x10] sm:$0xff] %vm400_vm1, %v503_v38 }
 0x16a   : > { %v675_v39 = vpop.f32.mrb[0].mxu0 }
 0x16b   : > { %402 = vst.msk [vmem:[%s256_s8 + $0x8] sm:$0xff] %vm400_vm1, %v675_v39  ;;  %v381_v40 = vpop.f32.mrb[1].mxu0 }
 0x16c   : > { %401 = vst.msk [vmem:[%s256_s8] sm:$0xff] %vm400_vm1, %v381_v40 }
 0x16e   : > { %v678_v41 = vpop.f32.mrb[2].mxu0 }
 0x16f   : > { %404 = vst.msk [vmem:[%s256_s8 + $0x18] sm:$0xff] %vm400_vm1, %v678_v41  ;;  %v391_v42 = vpop.f32.mrb[3].mxu0 }
 0x170   : > { %403 = vst.msk [vmem:[%s256_s8 + $0x10] sm:$0xff] %vm400_vm1, %v391_v42 }
 0x171 PF: > { %s16_s18 = sadd.s32 1, %s738_s18  }
 0x172   : > { %p13_p4 = scmp.ge.s32.totalorder %s16_s18, 10  }
 0x174   :  { %15 = sbr.rel (!%p13_p4) target bundleno = 1 (0x1), region = 81 }

</bundles_post_ra>
